<compile_context>
chip_gen: v7x
topology: tpu7x:2x2x1
jax: 0.10.0
libtpu: 0.0.40
codegen_flags: <defaults>
</compile_context>

<pallas_src>
import jax
import jax.numpy as jnp
from jax import lax
from jax.experimental import pallas as pl
from jax.experimental.pallas import tpu as pltpu

NEG_SLOPE = 0.2


def _conv_mm_kernel(w_ref, b_ref, p_ref, o_ref):
    # w_ref: [out_ch, K] bf16 (resident), b_ref: [out_ch, 1] f32 (resident),
    # p_ref: [K, TM]    bf16 (streamed),  o_ref: [out_ch, TM] bf16 (streamed).
    acc = jnp.dot(w_ref[...], p_ref[...], preferred_element_type=jnp.float32)
    acc = acc + b_ref[...]                        # bias on the f32 accumulator
    # LeakyReLU(0.2) in f32, downcast only at the store.
    o_ref[...] = jnp.where(acc > 0, acc, NEG_SLOPE * acc).astype(o_ref.dtype)


def _round_up(x, m):
    return (x + m - 1) // m * m


def _vmem_needed(out_ch, K, tm):
    # exact double-buffered streams + resident weight/bias (bytes).
    return (2 * K * tm * 2            # patches, bf16, double buffered
            + 2 * out_ch * tm * 2     # output, bf16, double buffered
            + out_ch * K * 2          # resident weight, bf16
            + out_ch * 4)             # resident bias, f32


def inconv_forward(x, weight, bias, out_dtype=jnp.bfloat16):
    """x: [N, C, H, W]; weight: [out_ch, in_ch, 4, 4]; bias: [out_ch]."""
    N, C, H, W = x.shape
    out_ch, in_ch, KH, KW = weight.shape
    assert in_ch == C and KH == 4 and KW == 4
    stride, pad = 2, 1
    OH = (H + 2 * pad - KH) // stride + 1
    OW = (W + 2 * pad - KW) // stride + 1
    M = OH * OW                        # per-image flattened output positions
    K = C * KH * KW

    # ---- glue: pad + im2col, emitted directly in (N, K, M) order ----
    # K ordered (c, kh, kw) to match weight.reshape(out_ch, -1); the reshape
    # below merges adjacent dims only, so there is no extra transpose pass.
    xpad = jnp.pad(x.astype(jnp.bfloat16),
                   ((0, 0), (0, 0), (pad, pad), (pad, pad)))
    taps = [xpad[:, :, kh:kh + stride * OH:stride, kw:kw + stride * OW:stride]
            for kh in range(KH) for kw in range(KW)]         # 16 x [N,C,OH,OW]
    patches = jnp.stack(taps, axis=2)                        # [N, C, 16, OH, OW]
    patches = patches.reshape(N, K, M)                       # free reshape

    # ---- tiling over the per-image M axis ----
    TM = min(8192, _round_up(M, 128))
    # keep >= 4 grid steps overall so v7x's two TensorCores both get work
    while TM > 128 and N * pl.cdiv(M, TM) < 4:
        TM = _round_up(TM // 2, 128)
    # respect the VMEM budget
    while TM > 128 and _vmem_needed(out_ch, K, TM) > 40 * 2**20:
        TM = _round_up(TM // 2, 128)
    M_pad = _round_up(M, TM)
    if M_pad != M:
        patches = jnp.pad(patches, ((0, 0), (0, 0), (0, M_pad - M)))
    grid = (N, M_pad // TM)

    w_mat = weight.reshape(out_ch, K).astype(jnp.bfloat16)   # [out_ch, K]
    b_mat = bias.reshape(out_ch, 1).astype(jnp.float32)      # [out_ch, 1]

    # exact need + 25% headroom, never below the 32 MiB scoped default,
    # capped at 48 MiB (fits v7x's 64 MiB physical VMEM).
    vmem_limit = int(min(max(int(1.25 * _vmem_needed(out_ch, K, TM)),
                             32 * 2**20),
                         48 * 2**20))

    out_flat = pl.pallas_call(
        _conv_mm_kernel,
        out_shape=jax.ShapeDtypeStruct((N, out_ch, M_pad), out_dtype),
        grid=grid,
        in_specs=[
            pl.BlockSpec((out_ch, K), lambda n, i: (0, 0)),      # weight resident
            pl.BlockSpec((out_ch, 1), lambda n, i: (0, 0)),      # bias resident
            pl.BlockSpec((None, K, TM), lambda n, i: (n, 0, i)), # patches stream
        ],
        out_specs=pl.BlockSpec((None, out_ch, TM), lambda n, i: (n, 0, i)),
        compiler_params=pltpu.CompilerParams(
            dimension_semantics=("parallel", "parallel"),
            vmem_limit_bytes=vmem_limit),
    )(w_mat, b_mat, patches)

    # ---- back to NCHW: slice off M padding + free reshape (no transpose) ----
    out = out_flat[:, :, :M].reshape(N, out_ch, OH, OW)
    return out


def _reference(x, weight, bias):
    y = lax.conv_general_dilated(
        x.astype(jnp.float32), weight.astype(jnp.float32),
        window_strides=(2, 2), padding=((1, 1), (1, 1)),
        dimension_numbers=("NCHW", "OIHW", "NCHW"))
    y = y + bias.reshape(1, -1, 1, 1)
    return jnp.where(y > 0, y, 0.2 * y)


if __name__ == "__main__":
    key = jax.random.PRNGKey(0)
    k_x, k_w, k_b = jax.random.split(key, 3)

    N, in_ch, H, W = 2, 4, 16, 16
    out_ch = 8

    x = jax.random.normal(k_x, (N, in_ch, H, W), dtype=jnp.float32)
    # deterministic synthetic parameters (Conv2d(in_ch, out_ch, 4))
    weight = 0.05 * jax.random.normal(k_w, (out_ch, in_ch, 4, 4), dtype=jnp.float32)
    bias = 0.05 * jax.random.normal(k_b, (out_ch,), dtype=jnp.float32)

    out = jax.block_until_ready(inconv_forward(x, weight, bias))
    ref = jax.block_until_ready(_reference(x, weight, bias))

    assert out.shape == (N, out_ch, H // 2, W // 2)
    assert out.dtype == jnp.bfloat16
    # bf16 MXU inputs + bf16 output store (f32 accumulation) vs f32 reference.
    assert jnp.allclose(out.astype(jnp.float32), ref, atol=2e-2, rtol=2e-2)

    print("KERNEL_OK")
</pallas_src>

<mosaic_0001>
module attributes {stable_mosaic.version = 11 : i64} {
  func.func @_conv_mm_kernel(%arg0: i32, %arg1: i32, %arg2: memref<8x64xbf16, #tpu.memory_space<vmem>>, %arg3: memref<8x1xf32, #tpu.memory_space<vmem>>, %arg4: memref<1x64x128xbf16, #tpu.memory_space<vmem>>, %arg5: memref<1x8x128xbf16, #tpu.memory_space<vmem>>) attributes {dimension_semantics = [#tpu.dimension_semantics<parallel>, #tpu.dimension_semantics<parallel>], iteration_bounds = array<i64: 2, 1>, scalar_prefetch = 0 : i64, scratch_operands = 0 : i64, tpu.core_type = #tpu.core_type<tc>, window_params = [{pipeline_mode = #tpu.pipeline_mode<synchronous>, transform_indices = @transform_0, window_bounds = array<i64: 8, 64>}, {pipeline_mode = #tpu.pipeline_mode<synchronous>, transform_indices = @transform_1, window_bounds = array<i64: 8, 1>}, {transform_indices = @transform_2, window_bounds = array<i64: 1, 64, 128>}, {transform_indices = @transform_3, window_bounds = array<i64: 1, 8, 128>}]} {
    %c0 = arith.constant 0 : index
    %c0_0 = arith.constant 0 : index
    %0 = vector.load %arg2[%c0, %c0_0] : memref<8x64xbf16, #tpu.memory_space<vmem>>, vector<8x64xbf16>
    %c0_1 = arith.constant 0 : index
    %c0_2 = arith.constant 0 : index
    %c0_3 = arith.constant 0 : index
    %1 = vector.load %arg4[%c0_1, %c0_2, %c0_3] : memref<1x64x128xbf16, #tpu.memory_space<vmem>>, vector<1x64x128xbf16>
    %2 = vector.shape_cast %1 : vector<1x64x128xbf16> to vector<64x128xbf16>
    %cst = arith.constant dense<0.000000e+00> : vector<8x128xf32>
    %3 = tpu.matmul %0, %2, %cst {dimension_numbers = #tpu.dot_dimension_numbers<[1], [0], [0], [1], [0, 0, 1, 1], [], []>} : vector<8x64xbf16>, vector<64x128xbf16>, vector<8x128xf32> -> vector<8x128xf32>
    %c0_4 = arith.constant 0 : index
    %c0_5 = arith.constant 0 : index
    %4 = vector.load %arg3[%c0_4, %c0_5] : memref<8x1xf32, #tpu.memory_space<vmem>>, vector<8x1xf32>
    %5 = vector.broadcast %4 : vector<8x1xf32> to vector<8x128xf32>
    %6 = arith.addf %3, %5 : vector<8x128xf32>
    %cst_6 = arith.constant 0.000000e+00 : f32
    %7 = vector.broadcast %cst_6 : f32 to vector<8x128xf32>
    %8 = arith.cmpf ogt, %6, %7 : vector<8x128xf32>
    %cst_7 = arith.constant 2.000000e-01 : f32
    %9 = vector.broadcast %cst_7 : f32 to vector<8x128xf32>
    %10 = arith.mulf %9, %6 : vector<8x128xf32>
    %11 = arith.select %8, %6, %10 : vector<8x128xi1>, vector<8x128xf32>
    %12 = arith.truncf %11 : vector<8x128xf32> to vector<8x128xbf16>
    %c0_8 = arith.constant 0 : index
    %c0_9 = arith.constant 0 : index
    %c0_10 = arith.constant 0 : index
    %13 = vector.load %arg5[%c0_8, %c0_9, %c0_10] : memref<1x8x128xbf16, #tpu.memory_space<vmem>>, vector<1x8x128xbf16>
    %14 = vector.shape_cast %13 : vector<1x8x128xbf16> to vector<8x128xbf16>
    %15 = vector.shape_cast %12 : vector<8x128xbf16> to vector<1x8x128xbf16>
    tpu.vector_store %arg5[%c0_8, %c0_9, %c0_10], %15 {strides = array<i32>} : memref<1x8x128xbf16, #tpu.memory_space<vmem>>, vector<1x8x128xbf16>,
    return
  }
  func.func @transform_0(%arg0: i32, %arg1: i32) -> (i32, i32) {
    %c0_i32 = arith.constant 0 : i32
    %c0_i32_0 = arith.constant 0 : i32
    %c0_i32_1 = arith.constant 0 : i32
    return %c0_i32, %c0_i32_0 : i32, i32
  }
  func.func @transform_1(%arg0: i32, %arg1: i32) -> (i32, i32) {
    %c0_i32 = arith.constant 0 : i32
    %c0_i32_0 = arith.constant 0 : i32
    %c0_i32_1 = arith.constant 0 : i32
    return %c0_i32, %c0_i32_0 : i32, i32
  }
  func.func @transform_2(%arg0: i32, %arg1: i32) -> (i32, i32, i32) {
    %c0_i32 = arith.constant 0 : i32
    %c0_i32_0 = arith.constant 0 : i32
    return %arg0, %c0_i32, %arg1 : i32, i32, i32
  }
  func.func @transform_3(%arg0: i32, %arg1: i32) -> (i32, i32, i32) {
    %c0_i32 = arith.constant 0 : i32
    %c0_i32_0 = arith.constant 0 : i32
    return %arg0, %c0_i32, %arg1 : i32, i32, i32
  }
}

</mosaic_0001>

<bundles_post_ra>
// kernel: tpu_custom_call.1
= control target key start
LH: loop header
LB: loop body
LE: loop exit
PB: predicated region body
PF: predicated region fallthrough
CT: control target
= control target key end

     0   :  { %8 = vsyncpa [#allocation3], 0  ;;  %s821_s0 = inlined_call_operand.vmem [shape: bf16[8,64], index: 0, kind: input, shape index: {}]   ;;  %s822_s1 = inlined_call_operand.vmem [shape: f32[8,1], index: 1, kind: input, shape index: {}]   ;;  %s823_s2 = inlined_call_operand.hbm [shape: bf16[2,64,128], index: 2, kind: input, shape index: {}]   ;;  %s824_s3 = inlined_call_operand.hbm [shape: bf16[2,8,128], index: 3, kind: output, shape index: {}]  }
   0x1   :  { %10 = vsyncpa [#allocation3 + $0x1], 0 }
   0x2   :  { %11 = vsyncpa [#allocation4], 0 }
   0x3   :  { %13 = vsyncpa [#allocation4 + $0x1], 0  ;;  %s641_s12 = smov 0   ;;  %s643_s13 = smov 0  }
   0x4   :  { %s645_s14 = smov 0   ;;  %s647_s15 = smov 0  }
   0x5   :  { %s649_s16 = smov 0   ;;  %s651_s17 = smov 0  }
   0x6 LB: > { %s391_s18 = sadd.s32 4294967295, %s612_s17   ;;  %s392_s19 = sadd.s32 4294967294, %s612_s17   ;;  %s612_s17 = sphi %s651_s17, %s19_s17   ;;  %s608_s16 = sphi %s649_s16, %s839_s16   ;;  %s604_s15 = sphi %s647_s15, %s838_s15   ;;  %s600_s14 = sphi %s645_s14, %s837_s14   ;;  %s596_s13 = sphi %s643_s13, %s836_s13   ;;  %s592_s12 = sphi %s641_s12, %s835_s12  }
   0x7   : > { %s31_s20 = sadd.s32 1, %s608_s16  ;;  %s82_s21 = sadd.s32 1, %s600_s14 }
   0x8   : > { %p33_p0 = scmp.ge.s32.totalorder %s31_s20, 2  ;;  %p89_p1 = scmp.ne.s32.totalorder %s600_s14, %s596_s13 }
   0x9   : > { %p90_p2 = scmp.eq.s32.totalorder %s612_s17, 0  ;;  %p95_p3 = scmp.ne.s32.totalorder %s596_s13, %s592_s12 }
   0xa   : > { %s841_s20 = smov (%p33_p0, %s31_s20), 0  ;;  %p96_p5 = scmp.eq.s32.totalorder %s391_s18, 0 }
   0xb   : > { %p682_p4 = por %p90_p2, %p89_p1  ;;  %s77_s23 = ssub.s32 %s608_s16, %s841_s20 }
   0xc   : > { %p121_p6 = scmp.eq.s32.totalorder %s391_s18, 1  ;;  %p80_p7 = scmp.eq.s32.totalorder %s77_s23, 0 }
   0xd   : > { %p688_p8 = por %p96_p5, %p95_p3  ;;  %p127_p10 = scmp.eq.s32.totalorder %s392_s19, 1 }
   0xe   : > { %p692_p9 = por %p121_p6, %p89_p1  ;;  %p440_p13 = scmp.lt.s32.totalorder %s612_s17, 2 }
   0xf   : > { %s697_s26 = scalar_select %p80_p7, %s600_s14, %s82_s21  }
  0x10   : > { %s828_s25 = scalar_select %p692_p9, 1, 0 }
  0x11   : > { %p699_p11 = por %p127_p10, %p95_p3  ;;  %s153_s28 = sand.u32 1, %s600_s14  }
  0x12   : > { %s395_s29 = sshll.u32 %s153_s28, 5  ;;  %s410_s30 = sshll.u32 %s608_s16, 9 }
  0x13   : > { %s829_s27 = scalar_select %p699_p11, 1, 0 }
  0x14   : > { %s710_s6 = scalar_lea.hbm %s823_s2, %s410_s30  ;;  %s157_s7 = scalar_lea.vmem [#allocation2], %s395_s29 }
  0x15   : > { %s165_s8 = sshll.u32 %s157_s7, 4  ;;  %p716_p0 = pnand %p440_p13, %p682_p4  ;;  %s712_s8 = int_to_ptr.vmem [resolvable:$true] %s165_s8 }
  0x16   : > { %s721_s10 = scalar_lea.sflag [#allocation3], %s153_s28  ;;  %s500_s11 = scalar_lea.hbm %s710_s6, 512 }
  0x17   : > { %p501_p2 = scmp.ne.s32.totalorder %s710_s6, %s500_s11  ;;  %p502_p3 = pneg %p716_p0 }
  0x18   : > { %s505_s21 = scalar_lea.hbm %s823_s2, 1024  ;;  %p506_p4 = scmp.lt.u32.totalorder %s710_s6, %s823_s2 }
  0x19   : > { %p503_p5 = pnand %p502_p3, %p501_p2  ;;  %p507_p7 = scmp.lt.u32.totalorder %s505_s21, %s500_s11 }
  0x1a   : > { %p509_p13 = scmp.lt.u32.totalorder %s500_s11, %s710_s6 }
  0x1b   : > { %p504_p6 = pneg %p503_p5  ;;  %p508_p10 = por %p507_p7, %p506_p4 }
  0x1d   : > { %p510_p12 = por %p509_p13, %p508_p10 }
  0x1f   : > { %p511_p1 = pnand %p510_p12, %p504_p6 }
  0x21   : > { %514 = shalt.err (!%p511_p1)
}
  0x22   : > { %s515_s28 = scalar_lea.vmem %s712_s8, 512  ;;  %s614_s29 = smov [#allocation2]  }
  0x23   : > { %p516_p2 = scmp.ne.s32.totalorder %s712_s8, %s515_s28  ;;  %s520_s30 = sshll.u32 %s614_s29, 4  ;;  %s521_s30 = int_to_ptr.vmem [resolvable:$false] %s520_s30 }
  0x24   : > { %s522_s4 = scalar_lea.vmem %s521_s30, 1024  ;;  %p523_p9 = scmp.lt.s32.totalorder %s712_s8, %s521_s30 }
  0x25   : > { %p518_p5 = pnand %p516_p2, %p502_p3  ;;  %p524_p4 = scmp.lt.s32.totalorder %s522_s4, %s515_s28 }
  0x27   : > { %p519_p11 = pneg %p518_p5  ;;  %p525_p7 = por %p524_p4, %p523_p9 }
  0x29   : > { %p526_p10 = pnand %p525_p7, %p519_p11 }
  0x2b   : > { %529 = shalt.err (!%p526_p10)
}
  0x2c   : > { %s615_s5 = smov 64   ;;  %s616_s7 = smov 4  }
  0x2d   : > { %435 = dma.hbm_to_vmem [thread:$0]  (!%p716_p0), %s710_s6, 512, %s712_s8, %s721_s10, %s615_s5, %s615_s5, %s616_s7  }
  0x2e   : > { %p173_p12 = scmp.lt.s32.totalorder %s612_s17, 3  ;;  %p831_p1 = scmp.ge.s32.totalorder %s612_s17, 1 }
  0x30   : > { %p174_p3 = pnand %p831_p1, %p173_p12 }
  0x31   : > { %s753_s11 = sand.u32 (!%p174_p3), 1, %s596_s13  }
  0x32   : > { %177 = sbr.rel (%p174_p3) target bundleno = 308 (0x134), region = 32  ;;  %s399_s18 = sshll.u32 (!%p174_p3), %s753_s11, 5 }
  0x33   : > { %s180_s19 = scalar_lea.sflag (!%p174_p3), [#allocation3], %s753_s11  ;;  %s183_s21 = scalar_lea.vmem (!%p174_p3), [#allocation2], %s399_s18 }
  0x39   : > { %583 = dma.done.wait (%p688_p8), %s180_s19, 512  }
  0x3a   : > { %585 = vsyncadd (%p688_p8), %s180_s19, 4294966784  ;;  %v617_v0 = vmov 0.0   ;;  %vm618_vm0 = vmmov 0   ;;  %v619_v1 = vmov 0   ;;  %v496_v2 = vld [vmem:[%s183_s21] sm:$0xff]   ;;  %v497_v3 = vld [vmem:[%s183_s21 + $0x8] sm:$0xff]  }
  0x3b   : > { %416 = vmatprep.subr.bf16.mxu0 %v617_v0  ;;  %424 = vmatprep.mubr.msk.bf16.mxu0 %vm618_vm0, %v617_v0  ;;  %v216_v4 = vld [vmem:[%s822_s1] sm:$0xff]  ;;  %v498_v5 = vld [vmem:[%s183_s21 + $0x10] sm:$0xff]   ;;  %v499_v6 = vld [vmem:[%s183_s21 + $0x18] sm:$0xff]   ;;  %vm246_vm1 = vcmask 523264   ;;  %s400_s10 = sshll.u32 %s753_s11, 2  ;;  %s407_s22 = sshll.u32 %s604_s15, 6 }
  0x3c   : > { %495 = vset.pattern.permute.xlu0 %v619_v1  ;;  %417 = vmatpush3.bf16.msra.mxu0 %v496_v2  ;;  %v207_v7 = vld [vmem:[%s821_s0] sm:$0xf]  ;;  %s205_s23 = scalar_lea.vmem [#allocation5], %s400_s10  ;;  %s772_s4 = scalar_lea.hbm %s824_s3, %s407_s22 }
  0x3d   : > { %418 = vmatprep.subr.bf16.mxu0 %v617_v0  ;;  %219 = vperm.xlu0 %495, %v216_v4   ;;  %s310_s28 = sshll.u32 %s205_s23, 4  ;;  %s296_s5 = scalar_lea.sflag [#allocation4], %s753_s11  ;;  %s774_s28 = int_to_ptr.vmem [resolvable:$true] %s310_s28 }
  0x3e   : > { %s530_s7 = scalar_lea.vmem %s774_s28, 64  ;;  %p832_p9 = scmp.ne.s32.totalorder %s828_s25, 0 }
  0x3f   : > { %p531_p8 = scmp.ne.s32.totalorder %s774_s28, %s530_s7  ;;  %s620_s15 = smov [#allocation5]  }
  0x40   : > { %419 = vmatpush3.bf16.msra.mxu0 %v497_v3  ;;  %s534_s18 = sshll.u32 %s620_s15, 4  ;;  %s535_s18 = int_to_ptr.vmem [resolvable:$false] %s534_s18 }
  0x41   : > { %420 = vmatprep.subr.bf16.mxu0 %v617_v0  ;;  %p532_p11 = pnand %p531_p8, %p832_p9  ;;  %s536_s19 = scalar_lea.vmem %s535_s18, 128 }
  0x42   : > { %p537_p6 = scmp.lt.s32.totalorder %s774_s28, %s535_s18  ;;  %p538_p13 = scmp.lt.s32.totalorder %s536_s19, %s530_s7 }
  0x43   : > { %p533_p0 = pneg %p532_p11 }
  0x44   : > { %421 = vmatpush3.bf16.msra.mxu0 %v498_v5  ;;  %p539_p2 = por %p538_p13, %p537_p6 }
  0x45   : > { %422 = vmatprep.subr.bf16.mxu0 %v617_v0 }
  0x46   : > { %p540_p5 = pnand %p539_p2, %p533_p0 }
  0x48   : > { %423 = vmatpush3.bf16.msra.mxu0 %v499_v6 }
  0x4b   : > { %425 = vmatmul.mubr.msk.bf16.vlgmr.msra.gmra.mrb[0].mxu0 %vm246_vm1, %v207_v7 }
  0xbc   : > { %v220_v8 = vpop.permute.xlu0 %219 }
 0x11e   : > { %v284_v9 = vpop.f32.mrb[0].mxu0 }
 0x11f   : > { %v285_v10 = vadd.f32 %v284_v9, %v220_v8  ;;  %v426_v11 = vpop.f32.mrb[1].mxu0 }
 0x120   : > { %v287_v12 = vpop.f32.mrb[2].mxu0 }
 0x121   : > { %vm290_vm2 = vcmp.gt.f32.partialorder %v285_v10, 0.0  ;;  %v291_v13 = vmul.f32 0.2, %v285_v10  ;;  %v427_v14 = vpop.f32.mrb[3].mxu0 }
 0x123   : > { %v292_v15 = vsel %vm290_vm2, %v285_v10, %v291_v13 }
 0x124   : > { %v293_v16 = vpack.c.bf16 %v292_v15, %v292_v15 }
 0x126   : > { %294 = vst [vmem:[%s205_s23] sm:$0xf] %v293_v16 }
 0x127   : > { %543 = shalt.err (!%p540_p5)
}
 0x128   : > { %s544_s11 = scalar_lea.hbm %s772_s4, 64  ;;  %s548_s8 = scalar_lea.hbm %s824_s3, 128 }
 0x129   : > { %p545_p4 = scmp.ne.s32.totalorder %s772_s4, %s544_s11  ;;  %p549_p12 = scmp.lt.u32.totalorder %s772_s4, %s824_s3 }
 0x12a   : > { %p550_p1 = scmp.lt.u32.totalorder %s548_s8, %s544_s11  ;;  %p552_p8 = scmp.lt.u32.totalorder %s544_s11, %s772_s4 }
 0x12b   : > { %p546_p7 = pnand %p545_p4, %p832_p9 }
 0x12c   : > { %p551_p3 = por %p550_p1, %p549_p12 }
 0x12d   : > { %p547_p10 = pneg %p546_p7 }
 0x12e   : > { %p553_p11 = por %p552_p8, %p551_p3 }
 0x130   : > { %p554_p0 = pnand %p553_p11, %p547_p10 }
 0x132   : > { %557 = shalt.err (!%p554_p0)
}
 0x133   : > { %430 = dma.vmem_to_hbm [thread:$0]  (%p832_p9), %s774_s28, 64, %s772_s4, %s296_s5  }
 0x134 PF: > { %s322_s10 = sand.u32 1, %s592_s12   ;;  %p833_p6 = scmp.ne.s32.totalorder %s829_s27, 0 }
 0x135   : > { %p834_p13 = scmp.ge.s32.totalorder %s612_s17, 2  ;;  %s323_s22 = scalar_lea.sflag [#allocation4], %s322_s10 }
 0x137   : > { %p437_p2 = pnand %p834_p13, %p833_p6 }
 0x139   : > { %587 = dma.done.wait (!%p437_p2), %s323_s22, 64  }
 0x13a   : > { %589 = vsyncadd (!%p437_p2), %s323_s22, 4294967232  ;;  %s19_s17 = sadd.s32 1, %s612_s17   ;;  %s835_s12 = smov %s596_s13 }
 0x13b   : > { %p16_p5 = scmp.ge.s32.totalorder %s19_s17, 4   ;;  %s836_s13 = smov %s600_s14 }
 0x13c   : > { %s837_s14 = smov %s697_s26  ;;  %s838_s15 = smov %s608_s16 }
 0x13d   : > { %s839_s16 = smov %s841_s20  ;;  %18 = sbr.rel (!%p16_p5) target bundleno = 6 (0x6), region = 77 }
 0x144   :  { %328 = vsyncpa [#allocation3], 1 }
 0x145   :  { %330 = vsyncpa [#allocation3 + $0x1], 1 }
 0x146   :  { %331 = vsyncpa [#allocation4], 1 }
 0x147   :  { %333 = vsyncpa [#allocation4 + $0x1], 1 }

</bundles_post_ra>
